<compile_context>
chip_gen: v7x
topology: tpu7x:2x2x1
jax: 0.10.0
libtpu: 0.0.40
codegen_flags: <defaults>
</compile_context>

<pallas_src>
import math

import jax
import jax.numpy as jnp
from jax.experimental import pallas as pl
from jax.experimental.pallas import tpu as pltpu


def _round_up(v, m):
    return ((v + m - 1) // m) * m


def mlp_kernel(xt_ref, w1t_ref, b1_ref, w2t_ref, b2_ref, w3t_ref, b3_ref, out_ref):
    state_dim, tb = xt_ref.shape
    hidden = w1t_ref.shape[0]

    # ---- Layer 1: h1T[h,b] = sum_k W1[k,h] * x[b,k] + b1[h], then ReLU ----
    if state_dim < 8:
        # K is tiny: VPU outer-product FMAs, skip the MXU push/pop latency.
        xt = xt_ref[...]                                   # (S, TB) f32
        w1t = w1t_ref[...]                                 # (H, S)  f32
        h1 = jnp.broadcast_to(b1_ref[...], (hidden, tb))   # hoisted broadcast
        for k in range(state_dim):                         # static unroll
            h1 = h1 + w1t[:, k:k + 1] * xt[k:k + 1, :]
    else:
        # Fallback MXU path: w1t is pre-cast to bf16 in the wrapper.
        h1 = jnp.dot(w1t_ref[...], xt_ref[...].astype(w1t_ref.dtype),
                     preferred_element_type=jnp.float32) + b1_ref[...]
    h1 = jnp.maximum(h1, 0.0)

    # ---- Layer 2: (H,H)@(H,TB) on the MXU, bf16 operands, f32 accumulate ----
    h2 = jnp.dot(w2t_ref[...], h1.astype(jnp.bfloat16),
                 preferred_element_type=jnp.float32) + b2_ref[...]
    h2 = jnp.maximum(h2, 0.0)

    # ---- Layer 3: (A,H)@(H,TB) -> lane-dense logits^T of shape (A, TB) ----
    logits = jnp.dot(w3t_ref[...], h2.astype(jnp.bfloat16),
                     preferred_element_type=jnp.float32) + b3_ref[...]

    # ---- Numerically-stable softmax over the action axis (axis 0) ----
    m = jnp.max(logits, axis=0, keepdims=True)
    e = jnp.exp(logits - m)
    denom = jnp.sum(e, axis=0, keepdims=True)
    out_ref[...] = (e / denom).astype(out_ref.dtype)       # exact: rows sum to 1


def mlp_forward(x, params, *, tb=8192):
    """Batch-tiled fused MLP forward, matching torch: softmax(net(x), dim=-1).

    tb: batch rows per grid step (lane dimension of every block). Per-step
    VMEM footprint is roughly 12*hidden + 8*state_dim + 24*action_dim bytes
    per row (~0.85 KB/row at hidden=64) plus ~25 KB of resident weights, so
    tb up to ~16k fits the smallest scoped-VMEM default (16 MiB on v5e) and
    tb up to ~32k fits v6e/v7x's 32 MiB default; past that the wrapper raises
    vmem_limit_bytes automatically (kept well below v7x's 64 MiB physical).
    tb is also clamped so the batch grid keeps >= 2 blocks (v7x megacore).
    """
    if x.ndim == 1:
        return mlp_forward(x[None, :], params, tb=tb)[0]

    w1, b1, w2, b2, w3, b3 = params
    batch, state_dim = x.shape
    hidden = w1.shape[1]
    action_dim = w3.shape[1]

    lane = 128
    tb = max(lane, min(_round_up(tb, lane), _round_up(pl.cdiv(batch, 2), lane)))
    padded = _round_up(batch, tb)
    num_blocks = padded // tb

    # Feature-major operands: x as (state_dim, batch); weights as (out, in);
    # biases as columns. W2/W3 are bf16 MXU operands; W1/biases stay f32.
    xt = x.T
    if padded != batch:
        xt = jnp.pad(xt, ((0, 0), (0, padded - batch)))
    w1t = w1.T if state_dim < 8 else w1.T.astype(jnp.bfloat16)
    b1c = b1.T
    w2t = w2.T.astype(jnp.bfloat16)
    b2c = b2.T
    w3t = w3.T.astype(jnp.bfloat16)
    b3c = b3.T

    def full(arr):
        return pl.BlockSpec(arr.shape, lambda i: (0,) * arr.ndim)

    # Raise the scoped-VMEM limit only if a caller-requested huge tb needs it.
    bytes_per_row = 12 * hidden + 8 * state_dim + 24 * action_dim
    est_vmem = tb * bytes_per_row + (2 << 20)
    compiler_kwargs = {"dimension_semantics": ("parallel",)}
    if est_vmem > (12 << 20):
        compiler_kwargs["vmem_limit_bytes"] = int(min(est_vmem + (4 << 20), 48 << 20))

    out_t = pl.pallas_call(
        mlp_kernel,
        out_shape=jax.ShapeDtypeStruct((action_dim, padded), jnp.float32),
        grid=(num_blocks,),
        in_specs=[
            pl.BlockSpec((state_dim, tb), lambda i: (0, i)),   # x^T: tiled batch
            full(w1t), full(b1c),                              # weights resident
            full(w2t), full(b2c),
            full(w3t), full(b3c),
        ],
        out_specs=pl.BlockSpec((action_dim, tb), lambda i: (0, i)),
        compiler_params=pltpu.CompilerParams(**compiler_kwargs),
    )(xt, w1t, b1c, w2t, b2c, w3t, b3c)

    return out_t[:, :batch].T                                  # (batch, action_dim)


def init_mlp_params(key, state_dim, action_dim, hidden=64):
    """torch.nn.Linear default init: U(-1/sqrt(fan_in), 1/sqrt(fan_in)).
    Weights stored as (in_features, out_features), biases as (1, out_features)."""
    dims = [(state_dim, hidden), (hidden, hidden), (hidden, action_dim)]
    params = []
    for fan_in, fan_out in dims:
        key, kw, kb = jax.random.split(key, 3)
        bound = 1.0 / math.sqrt(fan_in)
        w = jax.random.uniform(kw, (fan_in, fan_out), jnp.float32, -bound, bound)
        b = jax.random.uniform(kb, (1, fan_out), jnp.float32, -bound, bound)
        params += [w, b]
    return tuple(params)


if __name__ == "__main__":
    # Small CartPole-like shapes; batch=200 with the default tb clamps to
    # tb=128 -> a 2-block "parallel" grid with a half-padded last block,
    # exercising both the megacore split and the padding/slice path.
    batch, state_dim, action_dim, hidden = 200, 4, 2, 64

    key = jax.random.PRNGKey(0)
    key, kx = jax.random.split(key)
    x = jax.random.normal(kx, (batch, state_dim), dtype=jnp.float32)
    params = init_mlp_params(key, state_dim, action_dim, hidden)

    probs = mlp_forward(x, params)
    probs = jax.block_until_ready(probs)

    w1, b1, w2, b2, w3, b3 = params
    hp = jax.lax.Precision.HIGHEST

    # Reference mirroring the kernel's mixed precision (f32 layer 1; bf16 MXU
    # operands for layers 2/3 with f32 accumulate / elementwise).
    w2b = w2.astype(jnp.bfloat16).astype(jnp.float32)
    w3b = w3.astype(jnp.bfloat16).astype(jnp.float32)
    h1 = jnp.maximum(jnp.dot(x, w1, precision=hp) + b1, 0.0)
    h2 = jnp.maximum(
        jnp.dot(h1.astype(jnp.bfloat16).astype(jnp.float32), w2b, precision=hp) + b2, 0.0)
    logits = jnp.dot(h2.astype(jnp.bfloat16).astype(jnp.float32), w3b, precision=hp) + b3
    ref_mixed = jax.nn.softmax(logits, axis=-1)

    # Pure-f32 reference (the original PyTorch semantics), looser tolerance
    # to cover bf16 MXU rounding.
    h1f = jnp.maximum(jnp.dot(x, w1, precision=hp) + b1, 0.0)
    h2f = jnp.maximum(jnp.dot(h1f, w2, precision=hp) + b2, 0.0)
    ref_f32 = jax.nn.softmax(jnp.dot(h2f, w3, precision=hp) + b3, axis=-1)

    assert probs.shape == (batch, action_dim)
    assert bool(jnp.all(jnp.isfinite(probs)))
    assert jnp.allclose(probs, ref_mixed, atol=1e-3, rtol=1e-3)
    assert jnp.allclose(probs, ref_f32, atol=3e-2, rtol=3e-2)
    assert jnp.allclose(jnp.sum(probs, axis=-1), 1.0, atol=1e-5)

    print("KERNEL_OK")
</pallas_src>

<mosaic_0001>
module attributes {stable_mosaic.version = 11 : i64} {
  func.func @mlp_kernel(%arg0: i32, %arg1: memref<4x128xf32, #tpu.memory_space<vmem>>, %arg2: memref<64x4xf32, #tpu.memory_space<vmem>>, %arg3: memref<64x1xf32, #tpu.memory_space<vmem>>, %arg4: memref<64x64xbf16, #tpu.memory_space<vmem>>, %arg5: memref<64x1xf32, #tpu.memory_space<vmem>>, %arg6: memref<2x64xbf16, #tpu.memory_space<vmem>>, %arg7: memref<2x1xf32, #tpu.memory_space<vmem>>, %arg8: memref<2x128xf32, #tpu.memory_space<vmem>>) attributes {dimension_semantics = [#tpu.dimension_semantics<parallel>], iteration_bounds = array<i64: 2>, scalar_prefetch = 0 : i64, scratch_operands = 0 : i64, tpu.core_type = #tpu.core_type<tc>, window_params = [{transform_indices = @transform_0, window_bounds = array<i64: 4, 128>}, {pipeline_mode = #tpu.pipeline_mode<synchronous>, transform_indices = @transform_1, window_bounds = array<i64: 64, 4>}, {pipeline_mode = #tpu.pipeline_mode<synchronous>, transform_indices = @transform_2, window_bounds = array<i64: 64, 1>}, {pipeline_mode = #tpu.pipeline_mode<synchronous>, transform_indices = @transform_3, window_bounds = array<i64: 64, 64>}, {pipeline_mode = #tpu.pipeline_mode<synchronous>, transform_indices = @transform_4, window_bounds = array<i64: 64, 1>}, {pipeline_mode = #tpu.pipeline_mode<synchronous>, transform_indices = @transform_5, window_bounds = array<i64: 2, 64>}, {pipeline_mode = #tpu.pipeline_mode<synchronous>, transform_indices = @transform_6, window_bounds = array<i64: 2, 1>}, {transform_indices = @transform_7, window_bounds = array<i64: 2, 128>}]} {
    %c0 = arith.constant 0 : index
    %c0_0 = arith.constant 0 : index
    %0 = vector.load %arg1[%c0, %c0_0] : memref<4x128xf32, #tpu.memory_space<vmem>>, vector<4x128xf32>
    %c0_1 = arith.constant 0 : index
    %c0_2 = arith.constant 0 : index
    %1 = vector.load %arg2[%c0_1, %c0_2] : memref<64x4xf32, #tpu.memory_space<vmem>>, vector<64x4xf32>
    %c0_3 = arith.constant 0 : index
    %c0_4 = arith.constant 0 : index
    %2 = vector.load %arg3[%c0_3, %c0_4] : memref<64x1xf32, #tpu.memory_space<vmem>>, vector<64x1xf32>
    %3 = vector.shape_cast %2 : vector<64x1xf32> to vector<64x1xf32>
    %4 = vector.broadcast %3 : vector<64x1xf32> to vector<64x128xf32>
    %5 = vector.extract_strided_slice %1 {offsets = [0, 0], sizes = [64, 1], strides = [1, 1]} : vector<64x4xf32> to vector<64x1xf32>
    %6 = vector.extract_strided_slice %0 {offsets = [0, 0], sizes = [1, 128], strides = [1, 1]} : vector<4x128xf32> to vector<1x128xf32>
    %7 = vector.broadcast %5 : vector<64x1xf32> to vector<64x128xf32>
    %8 = vector.broadcast %6 : vector<1x128xf32> to vector<64x128xf32>
    %9 = arith.mulf %7, %8 : vector<64x128xf32>
    %10 = arith.addf %4, %9 : vector<64x128xf32>
    %11 = vector.extract_strided_slice %1 {offsets = [0, 1], sizes = [64, 1], strides = [1, 1]} : vector<64x4xf32> to vector<64x1xf32>
    %12 = vector.extract_strided_slice %0 {offsets = [1, 0], sizes = [1, 128], strides = [1, 1]} : vector<4x128xf32> to vector<1x128xf32>
    %13 = vector.broadcast %11 : vector<64x1xf32> to vector<64x128xf32>
    %14 = vector.broadcast %12 : vector<1x128xf32> to vector<64x128xf32>
    %15 = arith.mulf %13, %14 : vector<64x128xf32>
    %16 = arith.addf %10, %15 : vector<64x128xf32>
    %17 = vector.extract_strided_slice %1 {offsets = [0, 2], sizes = [64, 1], strides = [1, 1]} : vector<64x4xf32> to vector<64x1xf32>
    %18 = vector.extract_strided_slice %0 {offsets = [2, 0], sizes = [1, 128], strides = [1, 1]} : vector<4x128xf32> to vector<1x128xf32>
    %19 = vector.broadcast %17 : vector<64x1xf32> to vector<64x128xf32>
    %20 = vector.broadcast %18 : vector<1x128xf32> to vector<64x128xf32>
    %21 = arith.mulf %19, %20 : vector<64x128xf32>
    %22 = arith.addf %16, %21 : vector<64x128xf32>
    %23 = vector.extract_strided_slice %1 {offsets = [0, 3], sizes = [64, 1], strides = [1, 1]} : vector<64x4xf32> to vector<64x1xf32>
    %24 = vector.extract_strided_slice %0 {offsets = [3, 0], sizes = [1, 128], strides = [1, 1]} : vector<4x128xf32> to vector<1x128xf32>
    %25 = vector.broadcast %23 : vector<64x1xf32> to vector<64x128xf32>
    %26 = vector.broadcast %24 : vector<1x128xf32> to vector<64x128xf32>
    %27 = arith.mulf %25, %26 : vector<64x128xf32>
    %28 = arith.addf %22, %27 : vector<64x128xf32>
    %cst = arith.constant 0.000000e+00 : f32
    %29 = vector.broadcast %cst : f32 to vector<64x128xf32>
    %30 = arith.maximumf %28, %29 : vector<64x128xf32>
    %c0_5 = arith.constant 0 : index
    %c0_6 = arith.constant 0 : index
    %31 = vector.load %arg4[%c0_5, %c0_6] : memref<64x64xbf16, #tpu.memory_space<vmem>>, vector<64x64xbf16>
    %32 = arith.truncf %30 : vector<64x128xf32> to vector<64x128xbf16>
    %cst_7 = arith.constant dense<0.000000e+00> : vector<64x128xf32>
    %33 = tpu.matmul %31, %32, %cst_7 {dimension_numbers = #tpu.dot_dimension_numbers<[1], [0], [0], [1], [0, 0, 1, 1], [], []>} : vector<64x64xbf16>, vector<64x128xbf16>, vector<64x128xf32> -> vector<64x128xf32>
    %c0_8 = arith.constant 0 : index
    %c0_9 = arith.constant 0 : index
    %34 = vector.load %arg5[%c0_8, %c0_9] : memref<64x1xf32, #tpu.memory_space<vmem>>, vector<64x1xf32>
    %35 = vector.broadcast %34 : vector<64x1xf32> to vector<64x128xf32>
    %36 = arith.addf %33, %35 : vector<64x128xf32>
    %cst_10 = arith.constant 0.000000e+00 : f32
    %37 = vector.broadcast %cst_10 : f32 to vector<64x128xf32>
    %38 = arith.maximumf %36, %37 : vector<64x128xf32>
    %c0_11 = arith.constant 0 : index
    %c0_12 = arith.constant 0 : index
    %39 = vector.load %arg6[%c0_11, %c0_12] : memref<2x64xbf16, #tpu.memory_space<vmem>>, vector<2x64xbf16>
    %40 = arith.truncf %38 : vector<64x128xf32> to vector<64x128xbf16>
    %cst_13 = arith.constant dense<0.000000e+00> : vector<2x128xf32>
    %41 = tpu.matmul %39, %40, %cst_13 {dimension_numbers = #tpu.dot_dimension_numbers<[1], [0], [0], [1], [0, 0, 1, 1], [], []>} : vector<2x64xbf16>, vector<64x128xbf16>, vector<2x128xf32> -> vector<2x128xf32>
    %c0_14 = arith.constant 0 : index
    %c0_15 = arith.constant 0 : index
    %42 = vector.load %arg7[%c0_14, %c0_15] : memref<2x1xf32, #tpu.memory_space<vmem>>, vector<2x1xf32>
    %43 = vector.broadcast %42 : vector<2x1xf32> to vector<2x128xf32>
    %44 = arith.addf %41, %43 : vector<2x128xf32>
    %cst_16 = arith.constant dense<0xFF800000> : vector<128xf32>
    %45 = vector.multi_reduction <maximumf>, %44, %cst_16 [0] : vector<2x128xf32> to vector<128xf32>
    %46 = vector.shape_cast %45 : vector<128xf32> to vector<1x128xf32>
    %47 = vector.broadcast %46 : vector<1x128xf32> to vector<2x128xf32>
    %48 = arith.subf %44, %47 : vector<2x128xf32>
    %49 = math.exp %48 : vector<2x128xf32>
    %cst_17 = arith.constant dense<0.000000e+00> : vector<128xf32>
    %50 = vector.multi_reduction <add>, %49, %cst_17 [0] : vector<2x128xf32> to vector<128xf32>
    %51 = vector.shape_cast %50 : vector<128xf32> to vector<1x128xf32>
    %52 = vector.broadcast %51 : vector<1x128xf32> to vector<2x128xf32>
    %53 = arith.divf %49, %52 : vector<2x128xf32>
    %c0_18 = arith.constant 0 : index
    %c0_19 = arith.constant 0 : index
    %54 = vector.load %arg8[%c0_18, %c0_19] : memref<2x128xf32, #tpu.memory_space<vmem>>, vector<2x128xf32>
    tpu.vector_store %arg8[%c0_18, %c0_19], %53 {strides = array<i32>} : memref<2x128xf32, #tpu.memory_space<vmem>>, vector<2x128xf32>,
    return
  }
  func.func @transform_0(%arg0: i32) -> (i32, i32) {
    %c0_i32 = arith.constant 0 : i32
    %c0_i32_0 = arith.constant 0 : i32
    return %c0_i32, %arg0 : i32, i32
  }
  func.func @transform_1(%arg0: i32) -> (i32, i32) {
    %c0_i32 = arith.constant 0 : i32
    %c0_i32_0 = arith.constant 0 : i32
    %c0_i32_1 = arith.constant 0 : i32
    return %c0_i32, %c0_i32_0 : i32, i32
  }
  func.func @transform_2(%arg0: i32) -> (i32, i32) {
    %c0_i32 = arith.constant 0 : i32
    %c0_i32_0 = arith.constant 0 : i32
    %c0_i32_1 = arith.constant 0 : i32
    return %c0_i32, %c0_i32_0 : i32, i32
  }
  func.func @transform_3(%arg0: i32) -> (i32, i32) {
    %c0_i32 = arith.constant 0 : i32
    %c0_i32_0 = arith.constant 0 : i32
    %c0_i32_1 = arith.constant 0 : i32
    return %c0_i32, %c0_i32_0 : i32, i32
  }
  func.func @transform_4(%arg0: i32) -> (i32, i32) {
    %c0_i32 = arith.constant 0 : i32
    %c0_i32_0 = arith.constant 0 : i32
    %c0_i32_1 = arith.constant 0 : i32
    return %c0_i32, %c0_i32_0 : i32, i32
  }
  func.func @transform_5(%arg0: i32) -> (i32, i32) {
    %c0_i32 = arith.constant 0 : i32
    %c0_i32_0 = arith.constant 0 : i32
    %c0_i32_1 = arith.constant 0 : i32
    return %c0_i32, %c0_i32_0 : i32, i32
  }
  func.func @transform_6(%arg0: i32) -> (i32, i32) {
    %c0_i32 = arith.constant 0 : i32
    %c0_i32_0 = arith.constant 0 : i32
    %c0_i32_1 = arith.constant 0 : i32
    return %c0_i32, %c0_i32_0 : i32, i32
  }
  func.func @transform_7(%arg0: i32) -> (i32, i32) {
    %c0_i32 = arith.constant 0 : i32
    %c0_i32_0 = arith.constant 0 : i32
    return %c0_i32, %arg0 : i32, i32
  }
}

</mosaic_0001>

<bundles_post_ra>
// kernel: tpu_custom_call.1
= control target key start
LH: loop header
LB: loop body
LE: loop exit
PB: predicated region body
PF: predicated region fallthrough
CT: control target
= control target key end

     0   :  { %12 = vsyncpa [#allocation3], 0  ;;  %s1386_s0 = inlined_call_operand.vmem [shape: f32[4,256], index: 0, kind: input, shape index: {}]   ;;  %s1387_s1 = inlined_call_operand.vmem [shape: f32[64,4], index: 1, kind: input, shape index: {}]   ;;  %s1388_s2 = inlined_call_operand.vmem [shape: f32[64,1], index: 2, kind: input, shape index: {}]   ;;  %s1389_s3 = inlined_call_operand.vmem [shape: bf16[64,64], index: 3, kind: input, shape index: {}]   ;;  %s1390_s4 = inlined_call_operand.vmem [shape: f32[64,1], index: 4, kind: input, shape index: {}]   ;;  %s1391_s5 = inlined_call_operand.vmem [shape: bf16[2,64], index: 5, kind: input, shape index: {}]   ;;  %s1392_s6 = inlined_call_operand.vmem [shape: f32[2,1], index: 6, kind: input, shape index: {}]   ;;  %s1393_s7 = inlined_call_operand.hbm [shape: f32[2,256], index: 7, kind: output, shape index: {}]  }
   0x1   :  { %14 = vsyncpa [#allocation3 + $0x1], 0  ;;  %s1119_s24 = smov 0   ;;  %s1121_s25 = smov 0  }
   0x2   :  { %s1123_s26 = smov 0   ;;  %s1125_s27 = smov 0  }
   0x3 LB: > { %s1140_s28 = sadd.s32 4294967295, %s1070_s27   ;;  %s870_s29 = sadd.s32 4294967294, %s1070_s27   ;;  %s1070_s27 = sphi %s1125_s27, %s1399_s27   ;;  %s1066_s26 = sphi %s1123_s26, %s1398_s26   ;;  %s1062_s25 = sphi %s1121_s25, %s1397_s25   ;;  %s1058_s24 = sphi %s1119_s24, %s1396_s24  }
   0x4   : > { %s1144_s30 = sadd.s32 1, %s1070_s27   ;;  %s179_s8 = sadd.s32 1, %s1066_s26 }
   0x5   : > { %s176_s9 = ssub.s32 %s1070_s27, %s1144_s30  ;;  %p189_p0 = scmp.ne.s32.totalorder %s1066_s26, %s1062_s25 }
   0x6   : > { %p177_p1 = scmp.eq.s32.totalorder %s176_s9, 0  ;;  %p190_p2 = scmp.eq.s32.totalorder %s1140_s28, 1 }
   0x7   : > { %p195_p3 = scmp.ne.s32.totalorder %s1062_s25, %s1058_s24  ;;  %p196_p4 = scmp.eq.s32.totalorder %s870_s29, 1 }
   0x8   : > { %s1155_s10 = scalar_select %p177_p1, %s1066_s26, %s179_s8  }
   0x9   : > { %p1157_p5 = por %p190_p2, %p189_p0  ;;  %p1161_p6 = por %p196_p4, %p195_p3 }
   0xa   : > { %p873_p7 = scmp.ge.s32.totalorder %s1070_s27, 1  ;;  %p239_p8 = scmp.lt.s32.totalorder %s1070_s27, 3 }
   0xc   : > { %p240_p9 = pnand %p873_p7, %p239_p8 }
   0xd   : > { %v284_v0 = vld [vmem:[%s1388_s2] sm:$0xff] (!%p240_p9)  ;;  %v278_v1 = vld [vmem:[%s1387_s1 + $0x10] sm:$0xff] (!%p240_p9)  ;;  %v1072_v2 = vmov (!%p240_p9), 2   ;;  %v1073_v3 = vmov (!%p240_p9), 0   ;;  %v285_v4 = vld [vmem:[%s1388_s2 + $0x8] sm:$0xff] (!%p240_p9)  ;;  %v1074_v7 = vmov (!%p240_p9), 1   ;;  %v372_v38 = vlaneseq (!%p240_p9) }
   0xe   : > { %243 = sbr.rel (%p240_p9) target bundleno = 787 (0x313), region = 48  ;;  %983 = vset.pattern.permute.xlu0 (!%p240_p9), %v1072_v2  ;;  %975 = vset.pattern.permute.xlu1 (!%p240_p9), %v1073_v3  ;;  %v276_v5 = vld [vmem:[%s1387_s1] sm:$0xff] (!%p240_p9)  ;;  %v277_v6 = vld [vmem:[%s1387_s1 + $0x8] sm:$0xff] (!%p240_p9)  ;;  %v279_v8 = vld [vmem:[%s1387_s1 + $0x18] sm:$0xff] (!%p240_p9)  ;;  %v1075_v14 = vmov (!%p240_p9), 3   ;;  %vm636_vm0 = vcmask (!%p240_p9), 523264  }
   0xf   : > { %294 = vperm.xlu1 (!%p240_p9), %975, %v284_v0   ;;  %453 = vperm.xlu0 (!%p240_p9), %983, %v278_v1   ;;  %v286_v9 = vld [vmem:[%s1388_s2 + $0x10] sm:$0xff] (!%p240_p9)  ;;  %v289_v10 = vld [vmem:[%s1388_s2 + $0x28] sm:$0xff] (!%p240_p9)  ;;  %v283_v11 = vld [vmem:[%s1387_s1 + $0x38] sm:$0xff] (!%p240_p9)  ;;  %p270_p10 = scmp.lt.s32.totalorder (!%p240_p9), %s1140_s28, 1  ;;  %v373_v42 = vshrl.u32 (!%p240_p9), %v372_v38, 7  ;;  %vm1077_vm1 = vmmov (!%p240_p9), 0  }
  0x10   : > { %v287_v12 = vld [vmem:[%s1388_s2 + $0x18] sm:$0xff] (!%p240_p9)  ;;  %v290_v13 = vld [vmem:[%s1388_s2 + $0x30] sm:$0xff] (!%p240_p9)  ;;  %v280_v16 = vld [vmem:[%s1387_s1 + $0x20] sm:$0xff] (!%p240_p9)  ;;  %vm776_vm2 = vcmask (!%p240_p9), 1041408   ;;  %s886_s29 = sshll.u32 (!%p240_p9), %s1140_s28, 5 }
  0x11   : > { %v282_v15 = vld [vmem:[%s1387_s1 + $0x30] sm:$0xff] (!%p240_p9)  ;;  %v281_v17 = vld [vmem:[%s1387_s1 + $0x28] sm:$0xff] (!%p240_p9)  ;;  %v288_v18 = vld [vmem:[%s1388_s2 + $0x20] sm:$0xff] (!%p240_p9)  ;;  %v374_v45 = vsub.s32 (!%p240_p9), 0, %v373_v42  ;;  %v426_v50 = vsub.s32 (!%p240_p9), 1, %v373_v42  ;;  %v478_v52 = vsub.s32 (!%p240_p9), 2, %v373_v42  ;;  %s1344_s15 = scalar_lea.hbm (!%p240_p9), %s1393_s7, %s886_s29 }
  0x12   : > { %v291_v19 = vld [vmem:[%s1388_s2 + $0x38] sm:$0xff] (!%p240_p9)  ;;  %v1000_v20 = vld [vmem:[%s1389_s3] sm:$0xff] (!%p240_p9)   ;;  %v569_v25 = vld [vmem:[%s1390_s4 + $0x8] sm:$0xff] (!%p240_p9)  ;;  %v530_v57 = vsub.s32 (!%p240_p9), 3, %v373_v42 }
  0x13   : > { %299 = vperm.xlu1 (!%p240_p9), %975, %v285_v4   ;;  %984 = vset.pattern.permute.xlu0 (!%p240_p9), %v1073_v3  ;;  %v568_v26 = vld [vmem:[%s1390_s4] sm:$0xff] (!%p240_p9)  ;;  %v570_v29 = vld [vmem:[%s1390_s4 + $0x10] sm:$0xff] (!%p240_p9)  ;;  %v571_v30 = vld [vmem:[%s1390_s4 + $0x18] sm:$0xff] (!%p240_p9) }
  0x14   : > { %334 = vperm.xlu0 (!%p240_p9), %984, %v276_v5   ;;  %910 = vmatprep.mubr.msk.bf16.mxu0 (!%p240_p9), %vm636_vm0, %v1000_v20  ;;  %v572_v32 = vld [vmem:[%s1390_s4 + $0x20] sm:$0xff] (!%p240_p9)  ;;  %v573_v33 = vld [vmem:[%s1390_s4 + $0x28] sm:$0xff] (!%p240_p9)  ;;  %v574_v36 = vld [vmem:[%s1390_s4 + $0x30] sm:$0xff] (!%p240_p9) }
  0x15   : > { %s271_s17 = scalar_select %p270_p10, %s1140_s28, 1  ;;  %v575_v37 = vld [vmem:[%s1390_s4 + $0x38] sm:$0xff]  ;;  %v727_v41 = vld [vmem:[%s1392_s6] sm:$0x3] }
  0x16   : > { %s1078_s28 = smov [#allocation2]  }
  0x17   : > { %976 = vset.pattern.permute.xlu1 %v1074_v7  ;;  %s875_s22 = sshll.u32 %s271_s17, 2  ;;  %s1012_s18 = sshll.u32 %s1078_s28, 4  ;;  %s1013_s18 = int_to_ptr.vmem [resolvable:$false] %s1012_s18 }
  0x18   : > { %397 = vperm.xlu1 %976, %v277_v6   ;;  %339 = vperm.xlu0 %984, %v277_v6   ;;  %s273_s13 = scalar_lea.vmem %s1386_s0, %s875_s22  ;;  %s267_s22 = sand.u32 1, %s1062_s25  }
  0x19   : > { %v275_v46 = vld [vmem:[%s273_s13] sm:$0xf]  ;;  %s874_s23 = sshll.u32 %s267_s22, 1  ;;  %s798_s16 = scalar_lea.sflag [#allocation3], %s267_s22 }
  0x1a   : > { %v1276_v49 = vrot.slane %v275_v46, %v374_v45  ;;  %v1279_v54 = vrot.slane %v275_v46, %v426_v50  ;;  %v1282_v58 = vrot.slane %v275_v46, %v478_v52  ;;  %v1285_v0 = vrot.slane %v275_v46, %v530_v57  ;;  %s269_s8 = scalar_lea.vmem [#allocation2], %s874_s23  ;;  %s1014_s19 = scalar_lea.vmem %s1013_s18, 64 }
  0x1b   : > { %s811_s9 = sshll.u32 %s269_s8, 4  ;;  %s1346_s9 = int_to_ptr.vmem [resolvable:$true] %s811_s9 }
  0x1c   : > { %977 = vset.pattern.permute.xlu1 %v1073_v3  ;;  %349 = vperm.xlu0 %984, %v279_v8   ;;  %s1008_s17 = scalar_lea.vmem %s1346_s9, 32  ;;  %p1015_p0 = scmp.lt.s32.totalorder %s1346_s9, %s1013_s18 }
  0x1d   : > { %344 = vperm.xlu1 %977, %v278_v1   ;;  %p1009_p11 = scmp.ne.s32.totalorder %s1346_s9, %s1008_s17  ;;  %p1016_p1 = scmp.lt.s32.totalorder %s1014_s19, %s1008_s17 }
  0x1f   : > { %p1010_p12 = pnand %p1009_p11, %p1157_p5  ;;  %p1017_p2 = por %p1016_p1, %p1015_p0 }
  0x20   : > { %304 = vperm.xlu0 %984, %v286_v9  }
  0x21   : > { %978 = vset.pattern.permute.xlu1 %v1072_v2  ;;  %p1011_p13 = pneg %p1010_p12 }
  0x22   : > { %445 = vperm.xlu1 %978, %v276_v5  }
  0x23   : > { %p1018_p3 = pnand %p1017_p2, %p1011_p13 }
  0x24   : > { %319 = vperm.xlu0 %984, %v289_v10  }
  0x26   : > { %449 = vperm.xlu1 %978, %v277_v6  }
  0x28   : > { %369 = vperm.xlu0 %984, %v283_v11  }
  0x2a   : > { %979 = vset.pattern.permute.xlu1 %v1073_v3 }
  0x2b   : > { %309 = vperm.xlu1 %979, %v287_v12  }
  0x2c   : > { %324 = vperm.xlu0 %984, %v290_v13  }
  0x2f   : > { %980 = vset.pattern.permute.xlu1 %v1074_v7 }
  0x30   : > { %991 = vset.pattern.permute.xlu0 %v1074_v7  ;;  %405 = vperm.xlu1 %980, %v279_v8  }
  0x31   : > { %393 = vperm.xlu0 %991, %v276_v5  }
  0x34   : > { %981 = vset.pattern.permute.xlu1 %v1075_v14 }
  0x35   : > { %401 = vperm.xlu0 %991, %v278_v1   ;;  %497 = vperm.xlu1 %981, %v276_v5  }
  0x39   : > { %417 = vperm.xlu0 %991, %v282_v15   ;;  %982 = vset.pattern.permute.xlu1 %v1073_v3 }
  0x3a   : > { %354 = vperm.xlu1 %982, %v280_v16  }
  0x3d   : > { %993 = vset.pattern.permute.xlu0 %v1075_v14 }
  0x3e   : > { %501 = vperm.xlu0 %993, %v277_v6   ;;  %359 = vperm.xlu1 %982, %v281_v17  }
  0x42   : > { %505 = vperm.xlu0 %993, %v278_v1   ;;  %985 = vset.pattern.permute.xlu1 %v1072_v2 }
  0x43   : > { %457 = vperm.xlu1 %985, %v279_v8  }
  0x46   : > { %517 = vperm.xlu0 %993, %v281_v17  }
  0x47   : > { %986 = vset.pattern.permute.xlu1 %v1073_v3 }
  0x48   : > { %314 = vperm.xlu1 %986, %v288_v18  }
  0x4a   : > { %521 = vperm.xlu0 %993, %v282_v15  }
  0x4c   : > { %987 = vset.pattern.permute.xlu1 %v1074_v7 }
  0x4d   : > { %409 = vperm.xlu1 %987, %v280_v16  }
  0x4e   : > { %998 = vset.pattern.permute.xlu0 %v1073_v3 }
  0x4f   : > { %578 = vperm.xlu0 %998, %v568_v26  }
  0x51   : > { %413 = vperm.xlu1 %987, %v281_v17  }
  0x53   : > { %593 = vperm.xlu0 %998, %v571_v30  }
  0x55   : > { %988 = vset.pattern.permute.xlu1 %v1075_v14 }
  0x56   : > { %509 = vperm.xlu1 %988, %v279_v8  }
  0x57   : > { %603 = vperm.xlu0 %998, %v573_v33  }
  0x5a   : > { %989 = vset.pattern.permute.xlu1 %v1073_v3 }
  0x5b   : > { %364 = vperm.xlu1 %989, %v282_v15   ;;  %613 = vperm.xlu0 %998, %v575_v37  }
  0x5f   : > { %990 = vset.pattern.permute.xlu1 %v1072_v2 }
  0x60   : > { %461 = vperm.xlu1 %990, %v280_v16  }
  0x64   : > { %465 = vperm.xlu1 %990, %v281_v17  }
  0x68   : > { %992 = vset.pattern.permute.xlu1 %v1073_v3 }
  0x69   : > { %329 = vperm.xlu1 %992, %v291_v19  }
  0x6d   : > { %994 = vset.pattern.permute.xlu1 %v1074_v7 }
  0x6e   : > { %421 = vperm.xlu1 %994, %v283_v11  }
  0x72   : > { %995 = vset.pattern.permute.xlu1 %v1075_v14 }
  0x73   : > { %513 = vperm.xlu1 %995, %v280_v16  }
  0x77   : > { %996 = vset.pattern.permute.xlu1 %v1072_v2 }
  0x78   : > { %469 = vperm.xlu1 %996, %v282_v15  }
  0x7c   : > { %473 = vperm.xlu1 %996, %v283_v11  }
  0x80   : > { %997 = vset.pattern.permute.xlu1 %v1075_v14 }
  0x81   : > { %525 = vperm.xlu1 %997, %v283_v11  }
  0x85   : > { %999 = vset.pattern.permute.xlu1 %v1073_v3 }
  0x86   : > { %583 = vperm.xlu1 %999, %v569_v25  }
  0x8a   : > { %588 = vperm.xlu1 %999, %v570_v29  }
  0x8e   : > { %v295_v21 = vpop.permute.xlu1 %294  ;;  %v1234_v22 = vpop.permute.xlu0 %453  ;;  %598 = vperm.xlu1 %999, %v572_v32  }
  0x92   : > { %v300_v23 = vpop.permute.xlu1 %299  ;;  %608 = vperm.xlu1 %999, %v574_v36  }
  0x93   : > { %v335_v24 = vpop.permute.xlu0 %334 }
  0x94   : > { %v376_v53 = vmul.f32 %v1276_v49, %v335_v24 }
  0x96   : > { %730 = vperm.xlu1 %999, %v727_v41   ;;  %v384_v59 = vadd.f32 %v376_v53, %v295_v21 }
  0x97   : > { %v398_v27 = vpop.permute.xlu1 %397  ;;  %v340_v28 = vpop.permute.xlu0 %339 }
  0x98   : > { %v377_v60 = vmul.f32 %v1276_v49, %v340_v28  ;;  %v429_v5 = vmul.f32 %v1279_v54, %v398_v27  ;;  %v482_v28 = vmul.f32 %v1282_v58, %v1234_v22 }
  0x9a   : > { %v385_v1 = vadd.f32 %v377_v60, %v300_v23 }
  0x9b   : > { %v1249_v31 = vpop.permute.xlu0 %349 }
  0x9c   : > { %v345_v34 = vpop.permute.xlu1 %344  ;;  %v437_v9 = vadd.f32 %v429_v5, %v385_v1  ;;  %v379_v25 = vmul.f32 %v1276_v49, %v1249_v31 }
  0x9d   : > { %v378_v21 = vmul.f32 %v1276_v49, %v345_v34 }
  0x9f   : > { %v305_v35 = vpop.permute.xlu0 %304 }
  0xa0   : > { %v386_v26 = vadd.f32 %v378_v21, %v305_v35 }
  0xa1   : > { %v446_v39 = vpop.permute.xlu1 %445 }
  0xa2   : > { %v480_v2 = vmul.f32 %v1282_v58, %v446_v39 }
  0xa3   : > { %v1264_v40 = vpop.permute.xlu0 %319 }
  0xa5   : > { %v450_v43 = vpop.permute.xlu1 %449 }
  0xa6   : > { %v481_v6 = vmul.f32 %v1282_v58, %v450_v43 }
  0xa7   : > { %v1272_v44 = vpop.permute.xlu0 %369 }
  0xa8   : > { %v489_v12 = vadd.f32 %v481_v6, %v437_v9 }
  0xaa   : > { %v310_v47 = vpop.permute.xlu1 %309 }
  0xab   : > { %v1274_v48 = vpop.permute.xlu0 %324  ;;  %v387_v33 = vadd.f32 %v379_v25, %v310_v47 }
  0xaf   : > { %v406_v51 = vpop.permute.xlu1 %405 }
  0xb0   : > { %v394_v55 = vpop.permute.xlu0 %393  ;;  %v431_v29 = vmul.f32 %v1279_v54, %v406_v51 }
  0xb1   : > { %v428_v56 = vmul.f32 %v1279_v54, %v394_v55 }
  0xb2   : > { %v439_v37 = vadd.f32 %v431_v29, %v387_v33  ;;  %v1001_v33 = vld [vmem:[%s1389_s3 + $0x8] sm:$0xff]  }
  0xb3   : > { %v436_v63 = vadd.f32 %v428_v56, %v384_v59 }
  0xb4   : > { %v402_v61 = vpop.permute.xlu0 %401  ;;  %v498_v62 = vpop.permute.xlu1 %497 }
  0xb5   : > { %v488_v7 = vadd.f32 %v480_v2, %v436_v63  ;;  %v532_v8 = vmul.f32 %v1285_v0, %v498_v62  ;;  %v430_v23 = vmul.f32 %v1279_v54, %v402_v61 }
  0xb7   : > { %v540_v13 = vadd.f32 %v532_v8, %v488_v7  ;;  %v438_v30 = vadd.f32 %v430_v23, %v386_v26 }
  0xb8   : > { %v418_v3 = vpop.permute.xlu0 %417 }
  0xb9   : > { %v355_v4 = vpop.permute.xlu1 %354  ;;  %v548_v16 = vmax.f32 %v540_v13, 0.0  ;;  %v490_v38 = vadd.f32 %v482_v28, %v438_v30  ;;  %v434_v46 = vmul.f32 %v1279_v54, %v418_v3 }
  0xba   : > { %v380_v63 = vmul.f32 %v1276_v49, %v355_v4 }
  0xbd   : > { %v502_v10 = vpop.permute.xlu0 %501  ;;  %v360_v11 = vpop.permute.xlu1 %359 }
  0xbe   : > { %v533_v14 = vmul.f32 %v1285_v0, %v502_v10  ;;  %v381_v56 = vmul.f32 %v1276_v49, %v360_v11 }
  0xc0   : > { %v541_v15 = vadd.f32 %v533_v14, %v489_v12  ;;  %v389_v60 = vadd.f32 %v381_v56, %v1264_v40 }
  0xc1   : > { %v506_v27 = vpop.permute.xlu0 %505 }
  0xc2   : > { %v549_v17 = vmax.f32 %v541_v15, 0.0  ;;  %v458_v18 = vpop.permute.xlu1 %457  ;;  %v534_v36 = vmul.f32 %v1285_v0, %v506_v27 }
  0xc3   : > { %v483_v34 = vmul.f32 %v1282_v58, %v458_v18 }
  0xc4   : > { %v564_v19 = vpack.c.bf16 %v549_v17, %v548_v16  ;;  %v542_v41 = vadd.f32 %v534_v36, %v490_v38  ;;  %v383_v17 = vmul.f32 %v1276_v49, %v1272_v44  ;;  %v1076_v36 = vmov 0.0  }
  0xc5   : > { %v491_v42 = vadd.f32 %v483_v34, %v439_v37  ;;  %v518_v62 = vpop.permute.xlu0 %517  ;;  %918 = vmatprep.subr.bf16.mxu1 %v1076_v36  ;;  %926 = vmatprep.mubr.msk.bf16.mxu1 %vm1077_vm1, %v1076_v36 }
  0xc6   : > { %902 = vmatprep.subr.bf16.mxu0 %v564_v19  ;;  %v550_v43 = vmax.f32 %v542_v41, 0.0  ;;  %v537_v7 = vmul.f32 %v1285_v0, %v518_v62 }
  0xc7   : > { %v315_v20 = vpop.permute.xlu1 %314  ;;  %903 = vmatpush3.bf16.msra.mxu0 %v564_v19 }
  0xc8   : > { %v388_v3 = vadd.f32 %v380_v63, %v315_v20 }
  0xc9   : > { %v522_v20 = vpop.permute.xlu0 %521 }
  0xca   : > { %v538_v26 = vmul.f32 %v1285_v0, %v522_v20 }
  0xcc   : > { %v410_v24 = vpop.permute.xlu1 %409 }
  0xcd   : > { %v432_v1 = vmul.f32 %v1279_v54, %v410_v24 }
  0xce   : > { %v579_v37 = vpop.permute.xlu0 %578 }
  0xcf   : > { %v440_v8 = vadd.f32 %v432_v1, %v388_v3 }
  0xd0   : > { %v414_v32 = vpop.permute.xlu1 %413 }
  0xd1   : > { %v433_v59 = vmul.f32 %v1279_v54, %v414_v32 }
  0xd5   : > { %v510_v39 = vpop.permute.xlu1 %509 }
  0xd6   : > { %v535_v31 = vmul.f32 %v1285_v0, %v510_v39  ;;  %v594_v39 = vpop.permute.xlu0 %593 }
  0xd8   : > { %v543_v35 = vadd.f32 %v535_v31, %v491_v42 }
  0xda   : > { %v551_v45 = vmax.f32 %v543_v35, 0.0  ;;  %v365_v22 = vpop.permute.xlu1 %364 }
  0xdb   : > { %v382_v50 = vmul.f32 %v1276_v49, %v365_v22 }
  0xdc   : > { %v565_v47 = vpack.c.bf16 %v551_v45, %v550_v43 }
  0xdd   : > { %v390_v51 = vadd.f32 %v382_v50, %v1274_v48  ;;  %v441_v48 = vadd.f32 %v433_v59, %v389_v60  ;;  %v604_v50 = vpop.permute.xlu0 %603 }
  0xde   : > { %904 = vmatprep.subr.bf16.mxu0 %v565_v47 }
  0xdf   : > { %v462_v52 = vpop.permute.xlu1 %461  ;;  %905 = vmatpush3.bf16.msra.mxu0 %v565_v47  ;;  %v442_v53 = vadd.f32 %v434_v46, %v390_v51 }
  0xe0   : > { %v484_v5 = vmul.f32 %v1282_v58, %v462_v52 }
  0xe1   : > { %v614_v63 = vpop.permute.xlu0 %613 }
  0xe2   : > { %v492_v10 = vadd.f32 %v484_v5, %v440_v8 }
  0xe3   : > { %v466_v55 = vpop.permute.xlu1 %465 }
  0xe4   : > { %v485_v61 = vmul.f32 %v1282_v58, %v466_v55 }
  0xe6   : > { %v493_v6 = vadd.f32 %v485_v61, %v441_v48 }
  0xe8   : > { %v330_v57 = vpop.permute.xlu1 %329  ;;  %v545_v11 = vadd.f32 %v537_v7, %v493_v6 }
  0xe9   : > { %v391_v21 = vadd.f32 %v383_v17, %v330_v57 }
  0xea   : > { %v553_v13 = vmax.f32 %v545_v11, 0.0 }
  0xed   : > { %v422_v2 = vpop.permute.xlu1 %421 }
  0xee   : > { %v435_v18 = vmul.f32 %v1279_v54, %v422_v2 }
  0xf0   : > { %v443_v25 = vadd.f32 %v435_v18, %v391_v21 }
  0xf2   : > { %v514_v9 = vpop.permute.xlu1 %513 }
  0xf3   : > { %v536_v40 = vmul.f32 %v1285_v0, %v514_v9 }
  0xf5   : > { %v544_v12 = vadd.f32 %v536_v40, %v492_v10  ;;  %v722_v40 = vld [vmem:[%s1391_s5] sm:$0x1] }
  0xf7   : > { %v552_v14 = vmax.f32 %v544_v12, 0.0  ;;  %v470_v4 = vpop.permute.xlu1 %469 }
  0xf8   : > { %v486_v15 = vmul.f32 %v1282_v58, %v470_v4 }
  0xf9   : > { %v566_v16 = vpack.c.bf16 %v553_v13, %v552_v14 }
  0xfa   : > { %v494_v23 = vadd.f32 %v486_v15, %v442_v53 }
  0xfb   : > { %v474_v19 = vpop.permute.xlu1 %473  ;;  %906 = vmatprep.subr.bf16.mxu0 %v566_v16 }
  0xfc   : > { %907 = vmatpush3.bf16.msra.mxu0 %v566_v16  ;;  %v487_v24 = vmul.f32 %v1282_v58, %v474_v19  ;;  %v546_v28 = vadd.f32 %v538_v26, %v494_v23  ;;  %v1002_v58 = vld [vmem:[%s1389_s3 + $0x10] sm:$0xff]  }
  0xfe   : > { %v495_v29 = vadd.f32 %v487_v24, %v443_v25  ;;  %v554_v44 = vmax.f32 %v546_v28, 0.0 }
 0x100   : > { %v526_v27 = vpop.permute.xlu1 %525 }
 0x101   : > { %v539_v30 = vmul.f32 %v1285_v0, %v526_v27  ;;  %v1003_v0 = vld [vmem:[%s1389_s3 + $0x18] sm:$0xff]  }
 0x103   : > { %v547_v32 = vadd.f32 %v539_v30, %v495_v29 }
 0x105   : > { %v555_v49 = vmax.f32 %v547_v32, 0.0  ;;  %v584_v34 = vpop.permute.xlu1 %583 }
 0x107   : > { %v567_v54 = vpack.c.bf16 %v555_v49, %v554_v44 }
 0x109   : > { %908 = vmatprep.subr.bf16.mxu0 %v567_v54  ;;  %v589_v38 = vpop.permute.xlu1 %588 }
 0x10a   : > { %909 = vmatpush3.bf16.msra.mxu0 %v567_v54 }
 0x10d   : > { %911 = vmatmul.mubr.msk.bf16.vlgmr.msra.gmra.mrb[0].mxu0 %vm636_vm0, %v1001_v33  ;;  %v599_v35 = vpop.permute.xlu1 %598 }
 0x10e   : > { %914 = vmatprep.mubr.msk.bf16.mxu0 %vm636_vm0, %v1002_v58 }
 0x111   : > { %v609_v57 = vpop.permute.xlu1 %608 }
 0x115   : > { %915 = vmatmul.mubr.msk.bf16.gmra.mrb[4].mxu0 %vm636_vm0, %v1003_v0  ;;  %v731_v12 = vpop.permute.xlu1 %730 }
 0x1e0   : > { %v912_v41 = vpop.f32.mrb[0].mxu0 }
 0x1e1   : > { %v692_v42 = vadd.f32 %v912_v41, %v589_v38  ;;  %v683_v31 = vpop.f32.mrb[1].mxu0 }
 0x1e2   : > { %v684_v43 = vadd.f32 %v683_v31, %v579_v37  ;;  %v913_v45 = vpop.f32.mrb[2].mxu0 }
 0x1e3   : > { %v695_v22 = vadd.f32 %v913_v45, %v594_v39  ;;  %v686_v46 = vpop.f32.mrb[3].mxu0  ;;  %v716_v51 = vmax.f32 %v692_v42, 0.0 }
 0x1e4   : > { %v687_v47 = vadd.f32 %v686_v46, %v584_v34  ;;  %v714_v53 = vmax.f32 %v684_v43, 0.0 }
 0x1e5   : > { %v717_v52 = vmax.f32 %v695_v22, 0.0 }
 0x1e6   : > { %v715_v55 = vmax.f32 %v687_v47, 0.0 }
 0x1e7   : > { %v724_v56 = vpack.c.bf16 %v717_v52, %v716_v51 }
 0x1e8   : > { %v916_v59 = vpop.f32.mrb[4].mxu0  ;;  %v723_v60 = vpack.c.bf16 %v715_v55, %v714_v53 }
 0x1e9   : > { %v708_v61 = vadd.f32 %v916_v59, %v609_v57  ;;  %v699_v62 = vpop.f32.mrb[5].mxu0 }
 0x1ea   : > { %v700_v1 = vadd.f32 %v699_v62, %v599_v35  ;;  %v917_v48 = vpop.f32.mrb[6].mxu0  ;;  %919 = vmatpush3.bf16.msra.mxu1 %v723_v60 }
 0x1eb   : > { %v711_v2 = vadd.f32 %v917_v48, %v614_v63  ;;  %v702_v3 = vpop.f32.mrb[7].mxu0  ;;  %920 = vmatprep.subr.bf16.mxu1 %v1076_v36  ;;  %v720_v6 = vmax.f32 %v708_v61, 0.0 }
 0x1ec   : > { %v703_v5 = vadd.f32 %v702_v3, %v604_v50  ;;  %v718_v8 = vmax.f32 %v700_v1, 0.0 }
 0x1ed   : > { %v721_v7 = vmax.f32 %v711_v2, 0.0 }
 0x1ee   : > { %v719_v9 = vmax.f32 %v703_v5, 0.0  ;;  %921 = vmatpush3.bf16.msra.mxu1 %v724_v56 }
 0x1ef   : > { %v726_v10 = vpack.c.bf16 %v721_v7, %v720_v6  ;;  %922 = vmatprep.subr.bf16.mxu1 %v1076_v36 }
 0x1f0   : > { %v725_v11 = vpack.c.bf16 %v719_v9, %v718_v8 }
 0x1f2   : > { %923 = vmatpush3.bf16.msra.mxu1 %v725_v11 }
 0x1f3   : > { %924 = vmatprep.subr.bf16.mxu1 %v1076_v36 }
 0x1f6   : > { %925 = vmatpush3.bf16.msra.mxu1 %v726_v10 }
 0x1f9   : > { %927 = vmatmul.mubr.msk.bf16.vlgmr.msra.gmra.mrb[0].mxu1 %vm636_vm0, %v722_v40 }
 0x2cc   : > { %v770_v13 = vpop.f32.mrb[0].mxu1 }
 0x2cd   : > { %v771_v14 = vadd.f32 %v770_v13, %v731_v12  ;;  %v928_v4 = vpop.f32.mrb[1].mxu1 }
 0x2ce   : > { %v773_v15 = vpop.f32.mrb[2].mxu1 }
 0x2cf   : > { %v777_v16 = vsel %vm776_vm2, %v771_v14, -inf  ;;  %v929_v17 = vpop.f32.mrb[3].mxu1 }
 0x2d0   : > { %v778_v18 = vrot.slane %v777_v16, 4 }
 0x2d2   : > { %v779_v19 = vmax.f32 %v777_v16, %v778_v18 }
 0x2d4   : > { %v780_v20 = vrot.slane %v779_v19, 2 }
 0x2d6   : > { %v781_v21 = vmax.f32 %v779_v19, %v780_v20 }
 0x2d8   : > { %v782_v23 = vrot.slane %v781_v21, 1 }
 0x2da   : > { %v783_v24 = vmax.f32 %v781_v21, %v782_v23 }
 0x2dc   : > { %v784_v25 = vsub.f32 %v771_v14, %v783_v24 }
 0x2de   : > { %v785_v26 = vmul.f32 1.442695, %v784_v25 }
 0x2e0   : > { %1004 = vpow2.f32 %v785_v26 }
 0x2ea   : > { %v1005_v27 = vpop.eup %1004 }
 0x2eb   : > { %v787_v28 = vsel %vm776_vm2, %v1005_v27, 0.0 }
 0x2ec   : > { %v788_v29 = vrot.slane %v787_v28, 4 }
 0x2ee   : > { %v789_v30 = vadd.f32 %v788_v29, %v787_v28 }
 0x2f0   : > { %v790_v32 = vrot.slane %v789_v30, 2 }
 0x2f2   : > { %v791_v44 = vadd.f32 %v790_v32, %v789_v30 }
 0x2f4   : > { %v792_v49 = vrot.slane %v791_v44, 1 }
 0x2f6   : > { %v793_v54 = vadd.f32 %v792_v49, %v791_v44 }
 0x2f8   : > { %1006 = vrcp.f32 %v793_v54 }
 0x302   : > { %v1007_v33 = vpop.eup %1006 }
 0x303   : > { %v795_v58 = vmul.f32 %v1007_v33, %v1005_v27 }
 0x305   : > { %796 = vst [vmem:[%s269_s8] sm:$0x3] %v795_v58 }
 0x306   : > { %1021 = shalt.err (!%p1018_p3)
}
 0x307   : > { %s1022_s20 = scalar_lea.hbm %s1344_s15, 32  ;;  %s1026_s23 = scalar_lea.hbm %s1393_s7, 64 }
 0x308   : > { %p1023_p4 = scmp.ne.s32.totalorder %s1344_s15, %s1022_s20  ;;  %p1027_p9 = scmp.lt.u32.totalorder %s1344_s15, %s1393_s7 }
 0x309   : > { %p1028_p10 = scmp.lt.u32.totalorder %s1026_s23, %s1022_s20  ;;  %p1030_p12 = scmp.lt.u32.totalorder %s1022_s20, %s1344_s15 }
 0x30a   : > { %p1024_p7 = pnand %p1023_p4, %p1157_p5 }
 0x30b   : > { %p1029_p11 = por %p1028_p10, %p1027_p9 }
 0x30c   : > { %p1025_p8 = pneg %p1024_p7 }
 0x30d   : > { %p1031_p13 = por %p1030_p12, %p1029_p11 }
 0x30f   : > { %p1032_p0 = pnand %p1031_p13, %p1025_p8 }
 0x311   : > { %1035 = shalt.err (!%p1032_p0)
}
 0x312   : > { %930 = dma.vmem_to_hbm [thread:$0]  (%p1157_p5), %s1346_s9, 32, %s1344_s15, %s798_s16  }
 0x313 PF: > { %p936_p1 = scmp.ge.s32.totalorder %s1070_s27, 2  ;;  %s823_s13 = sand.u32 1, %s1058_s24  }
 0x314   : > { %s824_s14 = scalar_lea.sflag [#allocation3], %s823_s13 }
 0x315   : > { %p933_p2 = pnand %p936_p1, %p1161_p6 }
 0x317   : > { %1053 = dma.done.wait (!%p933_p2), %s824_s14, 32  }
 0x318   : > { %1055 = vsyncadd (!%p933_p2), %s824_s14, 4294967264  ;;  %p17_p3 = scmp.ge.s32.totalorder %s1144_s30, 4   ;;  %s1396_s24 = smov %s1062_s25 }
 0x319   : > { %s1397_s25 = smov %s1066_s26  ;;  %s1398_s26 = smov %s1155_s10 }
 0x31a   : > { %s1399_s27 = smov %s1144_s30  ;;  %19 = sbr.rel (!%p17_p3) target bundleno = 3 (0x3), region = 83 }
 0x321   :  { %829 = vsyncpa [#allocation3], 1 }
 0x322   :  { %831 = vsyncpa [#allocation3 + $0x1], 1 }

</bundles_post_ra>
